<compile_context>
chip_gen: v7x
topology: tpu7x:2x2x1
jax: 0.10.0
libtpu: 0.0.40
codegen_flags: <defaults>
</compile_context>

<pallas_src>
import math

import jax
import jax.numpy as jnp
from jax.experimental import pallas as pl
from jax.experimental.pallas import tpu as pltpu


def _round_up(n, m):
    return ((n + m - 1) // m) * m


def fcnet_kernel(x_ref, w1_ref, b1_ref, w2_ref, b2_ref, w3_ref, b3_ref, o_ref):
    # In-kernel bf16 cast of the x tile (no extra HBM write+re-read pass in the wrapper).
    x = x_ref[...].astype(jnp.bfloat16)
    # Layer 1: (TB, D_in)bf16 @ (D_in, 256)bf16 -> f32 acc; bias+ReLU in f32 on the VPU.
    h1 = jnp.dot(x, w1_ref[...], preferred_element_type=jnp.float32)
    h1 = jnp.maximum(h1 + b1_ref[...], 0.0)
    # Layer 2: (TB, 256) @ (256, 128)
    h2 = jnp.dot(h1.astype(jnp.bfloat16), w2_ref[...],
                 preferred_element_type=jnp.float32)
    h2 = jnp.maximum(h2 + b2_ref[...], 0.0)
    # Layer 3 (logits, padded to 128 lanes for lane-dense stores): (TB, 128) @ (128, 128)
    out = jnp.dot(h2.astype(jnp.bfloat16), w3_ref[...],
                  preferred_element_type=jnp.float32)
    o_ref[...] = (out + b3_ref[...]).astype(o_ref.dtype)


def prepare_fcnet_params(params):
    """One-time conversion of f32 params to kernel-ready form: bf16 weights (halves the
    weight DMA bytes), f32 biases (1, out) for VPU math, final layer padded to 128 lanes.
    Call this ONCE and reuse the result; it is deliberately outside the per-forward path."""
    num_classes = params["w3"].shape[1]
    n_pad = _round_up(max(num_classes, 128), 128)
    kp = {
        "w1": params["w1"].astype(jnp.bfloat16),
        "b1": params["b1"].reshape(1, -1).astype(jnp.float32),
        "w2": params["w2"].astype(jnp.bfloat16),
        "b2": params["b2"].reshape(1, -1).astype(jnp.float32),
        "w3": jnp.pad(params["w3"],
                      ((0, 0), (0, n_pad - num_classes))).astype(jnp.bfloat16),
        "b3": jnp.pad(params["b3"].reshape(1, -1),
                      ((0, 0), (0, n_pad - num_classes))).astype(jnp.float32),
    }
    return kp, num_classes


def fcnet_forward(x_nchw, kparams, num_classes, *, batch_tile=1024):
    """x_nchw: (B, C, H, W) float32 (or bf16 if the producer already emits bf16 — best).
    kparams: output of prepare_fcnet_params. Returns (B, num_classes) float32 logits."""
    B = x_nchw.shape[0]
    x = x_nchw.reshape(B, -1)                      # nn.Flatten(), row-major like torch
    d_in = x.shape[1]

    w1, b1 = kparams["w1"], kparams["b1"]
    w2, b2 = kparams["w2"], kparams["b2"]
    w3, b3 = kparams["w3"], kparams["b3"]
    h1_dim, h2_dim, n_pad = w1.shape[1], w2.shape[1], w3.shape[1]

    # --- batch tiling: TB multiple of 8 sublanes, big enough to amortize per-step cost ---
    TB = _round_up(min(batch_tile, B), 8)
    # v7x has 2 TensorCores: make sure the "parallel" batch grid has >= 2 tiles when the
    # batch is large enough, so both TCs get work (no effect on single-TC v5e/v6e).
    if B > 16 and pl.cdiv(B, TB) < 2:
        TB = _round_up(pl.cdiv(B, 2), 8)
    grid = (pl.cdiv(B, TB),)
    # No jnp.pad of x: Pallas masks the ragged last tile (rows are independent; the
    # out-of-range output rows are dropped on store), so no extra HBM copy of x.

    # --- VMEM budget: 2x double-buffered x tile + 2x out tile + resident weights + temps ---
    weight_bytes = sum(int(a.size) * a.dtype.itemsize for a in (w1, b1, w2, b2, w3, b3))
    vmem_limit = int(2 * TB * d_in * x.dtype.itemsize
                     + 2 * TB * n_pad * 4
                     + weight_bytes
                     + (8 << 20))                               # in-kernel temps + headroom
    vmem_limit = max(16 << 20, min(vmem_limit, 48 << 20))       # portable incl. v7x 64 MiB/TC

    cost = pl.CostEstimate(
        flops=2 * B * (d_in * h1_dim + h1_dim * h2_dim + h2_dim * n_pad),
        transcendentals=0,
        bytes_accessed=int(x.size * x.dtype.itemsize + weight_bytes + B * n_pad * 4),
    )

    # Weights/biases: constant index_map -> stay VMEM-resident across batch tiles.
    resident = lambda a: pl.BlockSpec(a.shape, lambda i: (0, 0))

    out_padded = pl.pallas_call(
        fcnet_kernel,
        out_shape=jax.ShapeDtypeStruct((B, n_pad), jnp.float32),
        grid=grid,
        in_specs=[
            pl.BlockSpec((TB, d_in), lambda i: (i, 0)),   # x tile, double-buffered DMA
            resident(w1), resident(b1),
            resident(w2), resident(b2),
            resident(w3), resident(b3),
        ],
        out_specs=pl.BlockSpec((TB, n_pad), lambda i: (i, 0)),
        compiler_params=pltpu.CompilerParams(
            dimension_semantics=("parallel",),
            vmem_limit_bytes=vmem_limit,
        ),
        cost_estimate=cost,
    )(x, w1, b1, w2, b2, w3, b3)

    # Lane slice back to the real class count (rows already exact: no row padding used).
    return out_padded[:, :num_classes]


def init_fcnet_params(key, d_in, num_classes=10):
    """PyTorch-Linear-style uniform(-1/sqrt(fan_in), 1/sqrt(fan_in)) init, deep=False shapes."""
    dims = [(d_in, 256), (256, 128), (128, num_classes)]
    params = {}
    for i, (fan_in, fan_out) in enumerate(dims, start=1):
        key, kw, kb = jax.random.split(key, 3)
        bound = 1.0 / math.sqrt(fan_in)
        params[f"w{i}"] = jax.random.uniform(
            kw, (fan_in, fan_out), jnp.float32, -bound, bound)
        params[f"b{i}"] = jax.random.uniform(
            kb, (1, fan_out), jnp.float32, -bound, bound)
    return params


def fcnet_reference(x_nchw, params):
    """Plain-JAX reference using the same bf16-operand / f32-accumulate math as the kernel."""
    bf = jnp.bfloat16
    x = x_nchw.reshape(x_nchw.shape[0], -1).astype(bf)
    h = jnp.dot(x, params["w1"].astype(bf), preferred_element_type=jnp.float32)
    h = jnp.maximum(h + params["b1"], 0.0)
    h = jnp.dot(h.astype(bf), params["w2"].astype(bf), preferred_element_type=jnp.float32)
    h = jnp.maximum(h + params["b2"], 0.0)
    out = jnp.dot(h.astype(bf), params["w3"].astype(bf), preferred_element_type=jnp.float32)
    return out + params["b3"]


if __name__ == "__main__":
    key = jax.random.PRNGKey(0)
    k_x, k_p = jax.random.split(key)

    # Small input consistent with an image classifier: batch=2, channels=4, 16x16
    B, C, H, W = 2, 4, 16, 16
    x = jax.random.normal(k_x, (B, C, H, W), jnp.float32)

    params = init_fcnet_params(k_p, d_in=C * H * W, num_classes=10)
    kparams, num_classes = prepare_fcnet_params(params)   # one-time, outside hot path

    out = fcnet_forward(x, kparams, num_classes)
    out = jax.block_until_ready(out)

    ref = fcnet_reference(x, params)
    assert out.shape == (B, 10), out.shape
    assert jnp.allclose(out, ref, atol=2e-3, rtol=2e-3), "mismatch vs reference"

    print("KERNEL_OK")
</pallas_src>

<mosaic_0001>
module attributes {stable_mosaic.version = 11 : i64} {
  func.func @fcnet_kernel(%arg0: i32, %arg1: memref<8x1024xf32, #tpu.memory_space<vmem>>, %arg2: memref<1024x256xbf16, #tpu.memory_space<vmem>>, %arg3: memref<1x256xf32, #tpu.memory_space<vmem>>, %arg4: memref<256x128xbf16, #tpu.memory_space<vmem>>, %arg5: memref<1x128xf32, #tpu.memory_space<vmem>>, %arg6: memref<128x128xbf16, #tpu.memory_space<vmem>>, %arg7: memref<1x128xf32, #tpu.memory_space<vmem>>, %arg8: memref<8x128xf32, #tpu.memory_space<vmem>>) attributes {dimension_semantics = [#tpu.dimension_semantics<parallel>], iteration_bounds = array<i64: 1>, scalar_prefetch = 0 : i64, scratch_operands = 0 : i64, tpu.core_type = #tpu.core_type<tc>, window_params = [{transform_indices = @transform_0, window_bounds = array<i64: 8, 1024>}, {pipeline_mode = #tpu.pipeline_mode<synchronous>, transform_indices = @transform_1, window_bounds = array<i64: 1024, 256>}, {pipeline_mode = #tpu.pipeline_mode<synchronous>, transform_indices = @transform_2, window_bounds = array<i64: 1, 256>}, {pipeline_mode = #tpu.pipeline_mode<synchronous>, transform_indices = @transform_3, window_bounds = array<i64: 256, 128>}, {pipeline_mode = #tpu.pipeline_mode<synchronous>, transform_indices = @transform_4, window_bounds = array<i64: 1, 128>}, {pipeline_mode = #tpu.pipeline_mode<synchronous>, transform_indices = @transform_5, window_bounds = array<i64: 128, 128>}, {pipeline_mode = #tpu.pipeline_mode<synchronous>, transform_indices = @transform_6, window_bounds = array<i64: 1, 128>}, {transform_indices = @transform_7, window_bounds = array<i64: 8, 128>}]} {
    %c0 = arith.constant 0 : index
    %c0_0 = arith.constant 0 : index
    %0 = vector.load %arg1[%c0, %c0_0] : memref<8x1024xf32, #tpu.memory_space<vmem>>, vector<8x1024xf32>
    %1 = arith.truncf %0 : vector<8x1024xf32> to vector<8x1024xbf16>
    %c0_1 = arith.constant 0 : index
    %c0_2 = arith.constant 0 : index
    %2 = vector.load %arg2[%c0_1, %c0_2] : memref<1024x256xbf16, #tpu.memory_space<vmem>>, vector<1024x256xbf16>
    %cst = arith.constant dense<0.000000e+00> : vector<8x256xf32>
    %3 = tpu.matmul %1, %2, %cst {dimension_numbers = #tpu.dot_dimension_numbers<[1], [0], [0], [1], [0, 0, 1, 1], [], []>} : vector<8x1024xbf16>, vector<1024x256xbf16>, vector<8x256xf32> -> vector<8x256xf32>
    %c0_3 = arith.constant 0 : index
    %c0_4 = arith.constant 0 : index
    %4 = vector.load %arg3[%c0_3, %c0_4] : memref<1x256xf32, #tpu.memory_space<vmem>>, vector<1x256xf32>
    %5 = vector.broadcast %4 : vector<1x256xf32> to vector<8x256xf32>
    %6 = arith.addf %3, %5 : vector<8x256xf32>
    %cst_5 = arith.constant 0.000000e+00 : f32
    %7 = vector.broadcast %cst_5 : f32 to vector<8x256xf32>
    %8 = arith.maximumf %6, %7 : vector<8x256xf32>
    %9 = arith.truncf %8 : vector<8x256xf32> to vector<8x256xbf16>
    %c0_6 = arith.constant 0 : index
    %c0_7 = arith.constant 0 : index
    %10 = vector.load %arg4[%c0_6, %c0_7] : memref<256x128xbf16, #tpu.memory_space<vmem>>, vector<256x128xbf16>
    %cst_8 = arith.constant dense<0.000000e+00> : vector<8x128xf32>
    %11 = tpu.matmul %9, %10, %cst_8 {dimension_numbers = #tpu.dot_dimension_numbers<[1], [0], [0], [1], [0, 0, 1, 1], [], []>} : vector<8x256xbf16>, vector<256x128xbf16>, vector<8x128xf32> -> vector<8x128xf32>
    %c0_9 = arith.constant 0 : index
    %c0_10 = arith.constant 0 : index
    %12 = vector.load %arg5[%c0_9, %c0_10] : memref<1x128xf32, #tpu.memory_space<vmem>>, vector<1x128xf32>
    %13 = vector.broadcast %12 : vector<1x128xf32> to vector<8x128xf32>
    %14 = arith.addf %11, %13 : vector<8x128xf32>
    %cst_11 = arith.constant 0.000000e+00 : f32
    %15 = vector.broadcast %cst_11 : f32 to vector<8x128xf32>
    %16 = arith.maximumf %14, %15 : vector<8x128xf32>
    %17 = arith.truncf %16 : vector<8x128xf32> to vector<8x128xbf16>
    %c0_12 = arith.constant 0 : index
    %c0_13 = arith.constant 0 : index
    %18 = vector.load %arg6[%c0_12, %c0_13] : memref<128x128xbf16, #tpu.memory_space<vmem>>, vector<128x128xbf16>
    %cst_14 = arith.constant dense<0.000000e+00> : vector<8x128xf32>
    %19 = tpu.matmul %17, %18, %cst_14 {dimension_numbers = #tpu.dot_dimension_numbers<[1], [0], [0], [1], [0, 0, 1, 1], [], []>} : vector<8x128xbf16>, vector<128x128xbf16>, vector<8x128xf32> -> vector<8x128xf32>
    %c0_15 = arith.constant 0 : index
    %c0_16 = arith.constant 0 : index
    %20 = vector.load %arg7[%c0_15, %c0_16] : memref<1x128xf32, #tpu.memory_space<vmem>>, vector<1x128xf32>
    %21 = vector.broadcast %20 : vector<1x128xf32> to vector<8x128xf32>
    %22 = arith.addf %19, %21 : vector<8x128xf32>
    %c0_17 = arith.constant 0 : index
    %c0_18 = arith.constant 0 : index
    %23 = vector.load %arg8[%c0_17, %c0_18] : memref<8x128xf32, #tpu.memory_space<vmem>>, vector<8x128xf32>
    tpu.vector_store %arg8[%c0_17, %c0_18], %22 {strides = array<i32>} : memref<8x128xf32, #tpu.memory_space<vmem>>, vector<8x128xf32>,
    return
  }
  func.func @transform_0(%arg0: i32) -> (i32, i32) {
    %c0_i32 = arith.constant 0 : i32
    %c0_i32_0 = arith.constant 0 : i32
    return %arg0, %c0_i32 : i32, i32
  }
  func.func @transform_1(%arg0: i32) -> (i32, i32) {
    %c0_i32 = arith.constant 0 : i32
    %c0_i32_0 = arith.constant 0 : i32
    %c0_i32_1 = arith.constant 0 : i32
    return %c0_i32, %c0_i32_0 : i32, i32
  }
  func.func @transform_2(%arg0: i32) -> (i32, i32) {
    %c0_i32 = arith.constant 0 : i32
    %c0_i32_0 = arith.constant 0 : i32
    %c0_i32_1 = arith.constant 0 : i32
    return %c0_i32, %c0_i32_0 : i32, i32
  }
  func.func @transform_3(%arg0: i32) -> (i32, i32) {
    %c0_i32 = arith.constant 0 : i32
    %c0_i32_0 = arith.constant 0 : i32
    %c0_i32_1 = arith.constant 0 : i32
    return %c0_i32, %c0_i32_0 : i32, i32
  }
  func.func @transform_4(%arg0: i32) -> (i32, i32) {
    %c0_i32 = arith.constant 0 : i32
    %c0_i32_0 = arith.constant 0 : i32
    %c0_i32_1 = arith.constant 0 : i32
    return %c0_i32, %c0_i32_0 : i32, i32
  }
  func.func @transform_5(%arg0: i32) -> (i32, i32) {
    %c0_i32 = arith.constant 0 : i32
    %c0_i32_0 = arith.constant 0 : i32
    %c0_i32_1 = arith.constant 0 : i32
    return %c0_i32, %c0_i32_0 : i32, i32
  }
  func.func @transform_6(%arg0: i32) -> (i32, i32) {
    %c0_i32 = arith.constant 0 : i32
    %c0_i32_0 = arith.constant 0 : i32
    %c0_i32_1 = arith.constant 0 : i32
    return %c0_i32, %c0_i32_0 : i32, i32
  }
  func.func @transform_7(%arg0: i32) -> (i32, i32) {
    %c0_i32 = arith.constant 0 : i32
    %c0_i32_0 = arith.constant 0 : i32
    return %arg0, %c0_i32 : i32, i32
  }
}

</mosaic_0001>

<bundles_post_ra>
// kernel: tpu_custom_call.1
= control target key start
LH: loop header
LB: loop body
LE: loop exit
PB: predicated region body
PF: predicated region fallthrough
CT: control target
= control target key end

     0   :  { %12 = vsyncpa [#allocation3], 0  ;;  %s2178_s0 = inlined_call_operand.hbm [shape: f32[2,1024], index: 0, kind: input, shape index: {}]   ;;  %s2179_s1 = inlined_call_operand.hbm [shape: bf16[1024,256], index: 1, kind: input, shape index: {}]   ;;  %s2180_s2 = inlined_call_operand.vmem [shape: f32[1,256], index: 2, kind: input, shape index: {}]   ;;  %s2181_s3 = inlined_call_operand.hbm [shape: bf16[256,128], index: 3, kind: input, shape index: {}]   ;;  %s2182_s4 = inlined_call_operand.vmem [shape: f32[1,128], index: 4, kind: input, shape index: {}]   ;;  %s2183_s5 = inlined_call_operand.hbm [shape: bf16[128,128], index: 5, kind: input, shape index: {}]   ;;  %s2184_s6 = inlined_call_operand.vmem [shape: f32[1,128], index: 6, kind: input, shape index: {}]   ;;  %s2185_s7 = inlined_call_operand.hbm [shape: f32[2,128], index: 7, kind: output, shape index: {}]  }
   0x1   :  { %13 = vsyncpa [#allocation6], 0 }
   0x2   :  { %14 = vsyncpa [#allocation9], 0 }
   0x3   :  { %15 = vsyncpa [#allocation4], 0 }
   0x4   :  { %20 = vsyncadd [#allocation3], 768  ;;  %s2022_s24 = smov [#allocation5]   ;;  %s1904_s28 = scalar_lea.hbm %s2179_s1, 16384 }
   0x5   :  { %s33_s25 = sshll.u32 %s2022_s24, 4  ;;  %p1905_p0 = scmp.ne.s32.totalorder %s2179_s1, %s1904_s28  ;;  %s34_s25 = int_to_ptr.vmem [resolvable:$true] %s33_s25 }
   0x6   :  { %p1908_p1 = scmp.lt.u32.totalorder %s1904_s28, %s2179_s1 }
   0x8   :  { %p1910_p2 = pnand %p1908_p1, %p1905_p0 }
   0xa   :  { %1913 = shalt.err (!%p1910_p2)
}
   0xb   :  { %s1914_s10 = scalar_lea.vmem %s34_s25, 16384  ;;  %p1919_p4 = scmp.lt.s32.totalorder %s34_s25, %s34_s25 }
   0xc   :  { %p1915_p3 = scmp.ne.s32.totalorder %s34_s25, %s1914_s10  ;;  %p1920_p5 = scmp.lt.s32.totalorder %s1914_s10, %s1914_s10 }
   0xe   :  { %p1921_p6 = por %p1920_p5, %p1919_p4 }
  0x10   :  { %p1922_p7 = pnand %p1921_p6, %p1915_p3 }
  0x12   :  { %1925 = shalt.err (!%p1922_p7)
}
  0x13   :  { %s2023_s11 = smov 128   ;;  %s2024_s12 = smov 8  }
  0x14   :  { %39 = dma.hbm_to_vmem [thread:$0]  %s2179_s1, 16384, %s34_s25, [#allocation6], %s2023_s11, %s2023_s11, %s2024_s12  }
  0x15   :  { %s2025_s15 = smov [#allocation2]   ;;  %s1926_s19 = scalar_lea.hbm %s2178_s0, 256 }
  0x16   :  { %s21_s16 = sshll.u32 %s2025_s15, 4  ;;  %p1927_p8 = scmp.ne.s32.totalorder %s2178_s0, %s1926_s19  ;;  %s22_s16 = int_to_ptr.vmem [resolvable:$true] %s21_s16 }
  0x17   :  { %p1930_p9 = scmp.lt.u32.totalorder %s1926_s19, %s2178_s0 }
  0x19   :  { %p1932_p10 = pnand %p1930_p9, %p1927_p8 }
  0x1b   :  { %1935 = shalt.err (!%p1932_p10)
}
  0x1c   :  { %s1936_s24 = scalar_lea.vmem %s22_s16, 256  ;;  %s1940_s1 = scalar_lea.vmem %s22_s16, 1024 }
  0x1d   :  { %p1937_p11 = scmp.ne.s32.totalorder %s22_s16, %s1936_s24  ;;  %p1941_p12 = scmp.lt.s32.totalorder %s22_s16, %s22_s16 }
  0x1e   :  { %p1942_p13 = scmp.lt.s32.totalorder %s1940_s1, %s1936_s24 }
  0x20   :  { %p1943_p0 = por %p1942_p13, %p1941_p12 }
  0x22   :  { %p1944_p1 = pnand %p1943_p0, %p1937_p11 }
  0x24   :  { %1947 = shalt.err (!%p1944_p1)
}
  0x25   :  { %s2026_s25 = smov 256   ;;  %s2027_s26 = smov 16  }
  0x26   :  { %27 = dma.hbm_to_vmem [thread:$0]  %s2178_s0, 256, %s22_s16, [#allocation3], %s2026_s25, %s2026_s25, %s2027_s26  }
  0x27   :  { %s2028_s29 = smov [#allocation7]   ;;  %s1948_s10 = scalar_lea.hbm %s2181_s3, 2048 }
  0x28   :  { %s47_s30 = sshll.u32 %s2028_s29, 4  ;;  %p1949_p2 = scmp.ne.s32.totalorder %s2181_s3, %s1948_s10  ;;  %s48_s30 = int_to_ptr.vmem [resolvable:$true] %s47_s30 }
  0x29   :  { %p1952_p3 = scmp.lt.u32.totalorder %s1948_s10, %s2181_s3 }
  0x2b   :  { %p1954_p4 = pnand %p1952_p3, %p1949_p2 }
  0x2d   :  { %1957 = shalt.err (!%p1954_p4)
}
  0x2e   :  { %s1958_s15 = scalar_lea.vmem %s48_s30, 2048  ;;  %p1963_p6 = scmp.lt.s32.totalorder %s48_s30, %s48_s30 }
  0x2f   :  { %p1959_p5 = scmp.ne.s32.totalorder %s48_s30, %s1958_s15  ;;  %p1964_p7 = scmp.lt.s32.totalorder %s1958_s15, %s1958_s15 }
  0x31   :  { %p1965_p8 = por %p1964_p7, %p1963_p6 }
  0x33   :  { %p1966_p9 = pnand %p1965_p8, %p1959_p5 }
  0x35   :  { %1969 = shalt.err (!%p1966_p9)
}
  0x36   :  { %s2029_s0 = smov 64   ;;  %s2030_s16 = smov 4  }
  0x37   :  { %53 = dma.hbm_to_vmem [thread:$0]  %s2181_s3, 2048, %s48_s30, [#allocation6], %s2029_s0, %s2029_s0, %s2030_s16  }
  0x38   :  { %s2031_s19 = smov [#allocation8]   ;;  %s1970_s23 = scalar_lea.hbm %s2183_s5, 1024 }
  0x39   :  { %s61_s20 = sshll.u32 %s2031_s19, 4  ;;  %p1971_p10 = scmp.ne.s32.totalorder %s2183_s5, %s1970_s23  ;;  %s62_s20 = int_to_ptr.vmem [resolvable:$true] %s61_s20 }
  0x3a   :  { %p1974_p11 = scmp.lt.u32.totalorder %s1970_s23, %s2183_s5 }
  0x3c   :  { %p1976_p12 = pnand %p1974_p11, %p1971_p10 }
  0x3e   :  { %1979 = shalt.err (!%p1976_p12)
}
  0x3f   :  { %s1980_s27 = scalar_lea.vmem %s62_s20, 1024  ;;  %p1985_p0 = scmp.lt.s32.totalorder %s62_s20, %s62_s20 }
  0x40   :  { %p1981_p13 = scmp.ne.s32.totalorder %s62_s20, %s1980_s27  ;;  %p1986_p1 = scmp.lt.s32.totalorder %s1980_s27, %s1980_s27 }
  0x42   :  { %p1987_p2 = por %p1986_p1, %p1985_p0 }
  0x44   :  { %p1988_p3 = pnand %p1987_p2, %p1981_p13 }
  0x46   :  { %1991 = shalt.err (!%p1988_p3)
}
  0x47   :  { %67 = dma.hbm_to_vmem [thread:$0]  %s2183_s5, 1024, %s62_s20, [#allocation9], %s2029_s0, %s2029_s0, %s2030_s16  }
  0x48   :  { %2014 = dma.done.wait [#allocation3], 1024  }
  0x49   :  { %2015 = vsyncadd [#allocation3], 4294966272 }
  0x4a   :  { %2016 = dma.done.wait [#allocation6], 18432  }
  0x4b   :  { %2017 = vsyncadd [#allocation6], 4294948864 }
  0x4c   :  { %2018 = dma.done.wait [#allocation9], 1024  }
  0x4d   :  { %2019 = vsyncadd [#allocation9], 4294966272  ;;  %v1676_v0 = vld [vmem:[#allocation5 + $0x104] ss:$8 sps:$4 sm:$0xff]   ;;  %v1678_v1 = vld [vmem:[#allocation5 + $0x100] ss:$8 sps:$4 sm:$0xff]   ;;  %v106_v11 = vlaneseq }
  0x4e   :  { %1008 = vmatprep.subr.bf16.mxu0 %v1676_v0  ;;  %v1679_v2 = vld [vmem:[#allocation5 + $0x114] ss:$8 sps:$4 sm:$0xff]   ;;  %v1681_v3 = vld [vmem:[#allocation5 + $0x110] ss:$8 sps:$4 sm:$0xff]   ;;  %v1682_v4 = vld [vmem:[#allocation5 + $0x124] ss:$8 sps:$4 sm:$0xff]  }
  0x4f   :  { %1009 = vmatpush1.bf16.msra.mxu0 %v1678_v1  ;;  %v1684_v5 = vld [vmem:[#allocation5 + $0x120] ss:$8 sps:$4 sm:$0xff]   ;;  %v1685_v6 = vld [vmem:[#allocation5 + $0x134] ss:$8 sps:$4 sm:$0xff]   ;;  %v1687_v7 = vld [vmem:[#allocation5 + $0x130] ss:$8 sps:$4 sm:$0xff]  }
  0x50   :  { %1010 = vmatprep.subr.bf16.mxu0 %v1679_v2  ;;  %v1688_v8 = vld [vmem:[#allocation5 + $0x144] ss:$8 sps:$4 sm:$0xff]   ;;  %v2032_v9 = vmov 1983009808   ;;  %v1690_v12 = vld [vmem:[#allocation5 + $0x140] ss:$8 sps:$4 sm:$0xff]  }
  0x51   :  { %v104_v10 = vunpack.c.l.s4 %v2032_v9  ;;  %v1691_v13 = vld [vmem:[#allocation5 + $0x154] ss:$8 sps:$4 sm:$0xff]   ;;  %v2126_v15 = vshrl.u32 %v106_v11, 7  ;;  %v1693_v16 = vld [vmem:[#allocation5 + $0x150] ss:$8 sps:$4 sm:$0xff]   ;;  %vm2034_vm0 = vmmov 0  }
  0x52   :  { %v1694_v17 = vld [vmem:[#allocation5 + $0x164] ss:$8 sps:$4 sm:$0xff]   ;;  %v1696_v19 = vld [vmem:[#allocation5 + $0x160] ss:$8 sps:$4 sm:$0xff]   ;;  %v1697_v22 = vld [vmem:[#allocation5 + $0x174] ss:$8 sps:$4 sm:$0xff]  }
  0x53   :  { %1011 = vmatpush1.bf16.msra.mxu0 %v1681_v3  ;;  %v105_v14 = vunpack.c.0.s8 %v104_v10  ;;  %v1724_v20 = vld [vmem:[#allocation2 + $0x4] ss:$16 sps:$4 sm:$0xff]   ;;  %v1699_v25 = vld [vmem:[#allocation5 + $0x170] ss:$8 sps:$4 sm:$0xff]   ;;  %v1702_v29 = vld [vmem:[#allocation5 + $0x180] ss:$8 sps:$4 sm:$0xff]  }
  0x54   :  { %1012 = vmatprep.subr.bf16.mxu0 %v1682_v4  ;;  %v1726_v21 = vld [vmem:[#allocation2 + $0x24] ss:$16 sps:$4 sm:$0xff]   ;;  %v1705_v31 = vld [vmem:[#allocation5 + $0x190] ss:$8 sps:$4 sm:$0xff]   ;;  %v1708_v33 = vld [vmem:[#allocation5 + $0x1a0] ss:$8 sps:$4 sm:$0xff]  }
  0x55   :  { %v2129_v18 = vsub.s32 %v105_v14, %v2126_v15  ;;  %v1700_v27 = vld [vmem:[#allocation5 + $0x184] ss:$8 sps:$4 sm:$0xff]   ;;  %v1703_v30 = vld [vmem:[#allocation5 + $0x194] ss:$8 sps:$4 sm:$0xff]   ;;  %v1711_v35 = vld [vmem:[#allocation5 + $0x1b0] ss:$8 sps:$4 sm:$0xff]  }
  0x56   :  { %v1706_v32 = vld [vmem:[#allocation5 + $0x1a4] ss:$8 sps:$4 sm:$0xff]   ;;  %v1709_v34 = vld [vmem:[#allocation5 + $0x1b4] ss:$8 sps:$4 sm:$0xff]   ;;  %v1775_v38 = vld [vmem:[#allocation5] ss:$8 sps:$4 sm:$0xff]  }
  0x57   :  { %1013 = vmatpush1.bf16.msra.mxu0 %v1684_v5  ;;  %v116_v23 = vrot.slane %v1724_v20, %v2129_v18  ;;  %v130_v24 = vrot.slane %v1726_v21, %v2129_v18  ;;  %v1712_v36 = vld [vmem:[#allocation5 + $0x1c4] ss:$8 sps:$4 sm:$0xff]   ;;  %v1714_v39 = vld [vmem:[#allocation5 + $0x1c0] ss:$8 sps:$4 sm:$0xff]   ;;  %v1715_v40 = vld [vmem:[#allocation5 + $0x1d4] ss:$8 sps:$4 sm:$0xff]  }
  0x58   :  { %1014 = vmatprep.subr.bf16.mxu0 %v1685_v6  ;;  %v1773_v37 = vld [vmem:[#allocation5 + $0x4] ss:$8 sps:$4 sm:$0xff]   ;;  %v1779_v41 = vld [vmem:[#allocation5 + $0x14] ss:$8 sps:$4 sm:$0xff]   ;;  %v1781_v42 = vld [vmem:[#allocation5 + $0x10] ss:$8 sps:$4 sm:$0xff]  }
  0x59   :  { %v134_v26 = vcombine.high %v116_v23, %v130_v24  ;;  %967 = vmatprep.subr.bf16.mxu1 %v1773_v37  ;;  %v1782_v43 = vld [vmem:[#allocation2 + $0x8] ss:$16 sps:$4 sm:$0xff]   ;;  %v1789_v48 = vld [vmem:[#allocation5 + $0x24] ss:$8 sps:$4 sm:$0xff]   ;;  %v1795_v53 = vld [vmem:[#allocation5 + $0x34] ss:$8 sps:$4 sm:$0xff]   ;;  %v133_v58 = vcombine.low %v116_v23, %v130_v24 }
  0x5a   :  { %968 = vmatpush1.bf16.msra.mxu1 %v1775_v38  ;;  %v1784_v44 = vld [vmem:[#allocation2 + $0x28] ss:$16 sps:$4 sm:$0xff]   ;;  %v145_v46 = vrot.slane %v1782_v43, %v2129_v18  ;;  %v1718_v50 = vld [vmem:[#allocation5 + $0x1e4] ss:$8 sps:$4 sm:$0xff]   ;;  %v1721_v54 = vld [vmem:[#allocation5 + $0x1f4] ss:$8 sps:$4 sm:$0xff]  }
  0x5b   :  { %1015 = vmatpush1.bf16.msra.mxu0 %v1687_v7  ;;  %v182_v28 = vpack.c.bf16 %v134_v26, %v134_v26  ;;  %969 = vmatprep.subr.bf16.mxu1 %v1779_v41  ;;  %v1717_v45 = vld [vmem:[#allocation5 + $0x1d0] ss:$8 sps:$4 sm:$0xff]   ;;  %v159_v47 = vrot.slane %v1784_v44, %v2129_v18  ;;  %v1791_v49 = vld [vmem:[#allocation5 + $0x20] ss:$8 sps:$4 sm:$0xff]   ;;  %v1801_v56 = vld [vmem:[#allocation5 + $0x44] ss:$8 sps:$4 sm:$0xff]   ;;  %v181_v63 = vpack.c.bf16 %v133_v58, %v133_v58 }
  0x5c   :  { %1016 = vmatprep.subr.bf16.mxu0 %v1688_v8  ;;  %v1720_v52 = vld [vmem:[#allocation5 + $0x1e0] ss:$8 sps:$4 sm:$0xff]   ;;  %v1797_v55 = vld [vmem:[#allocation5 + $0x30] ss:$8 sps:$4 sm:$0xff]   ;;  %v1730_v59 = vld [vmem:[#allocation5 + $0x204] ss:$8 sps:$4 sm:$0xff]  }
  0x5d   :  { %1040 = vmatprep.mubr.bf16.mxu0 %v182_v28  ;;  %v2135_v51 = vcombine.low %v145_v46, %v159_v47  ;;  %v1723_v57 = vld [vmem:[#allocation5 + $0x1f0] ss:$8 sps:$4 sm:$0xff]   ;;  %v168_v60 = vcombine.high %v145_v46, %v159_v47  ;;  %v1803_v61 = vld [vmem:[#allocation5 + $0x40] ss:$8 sps:$4 sm:$0xff]   ;;  %v1807_v62 = vld [vmem:[#allocation5 + $0x54] ss:$8 sps:$4 sm:$0xff]  }
  0x5e   :  { %970 = vmatpush1.bf16.msra.mxu1 %v1781_v42  ;;  %v1728_v0 = vld [vmem:[#allocation5 + $0x200] ss:$8 sps:$4 sm:$0xff]   ;;  %v1733_v1 = vld [vmem:[#allocation5 + $0x214] ss:$8 sps:$4 sm:$0xff]   ;;  %v1809_v3 = vld [vmem:[#allocation5 + $0x50] ss:$8 sps:$4 sm:$0xff]  }
  0x5f   :  { %1017 = vmatpush1.bf16.msra.mxu0 %v1690_v12  ;;  %971 = vmatprep.subr.bf16.mxu1 %v1789_v48  ;;  %v184_v2 = vpack.c.bf16 %v168_v60, %v168_v60  ;;  %v1813_v4 = vld [vmem:[#allocation5 + $0x64] ss:$8 sps:$4 sm:$0xff]   ;;  %v1731_v5 = vld [vmem:[#allocation5 + $0x210] ss:$8 sps:$4 sm:$0xff]   ;;  %v1815_v7 = vld [vmem:[#allocation5 + $0x60] ss:$8 sps:$4 sm:$0xff]  }
  0x60   :  { %1018 = vmatprep.subr.bf16.mxu0 %v1691_v13  ;;  %v1736_v6 = vld [vmem:[#allocation5 + $0x224] ss:$8 sps:$4 sm:$0xff]   ;;  %v1819_v8 = vld [vmem:[#allocation5 + $0x74] ss:$8 sps:$4 sm:$0xff]   ;;  %v1734_v9 = vld [vmem:[#allocation5 + $0x220] ss:$8 sps:$4 sm:$0xff]  }
  0x61   :  { %v1739_v10 = vld [vmem:[#allocation5 + $0x234] ss:$8 sps:$4 sm:$0xff]   ;;  %v1821_v11 = vld [vmem:[#allocation5 + $0x70] ss:$8 sps:$4 sm:$0xff]   ;;  %v1825_v12 = vld [vmem:[#allocation5 + $0x84] ss:$8 sps:$4 sm:$0xff]  }
  0x62   :  { %972 = vmatpush1.bf16.msra.mxu1 %v1791_v49  ;;  %v1737_v13 = vld [vmem:[#allocation5 + $0x230] ss:$8 sps:$4 sm:$0xff]   ;;  %v1742_v14 = vld [vmem:[#allocation5 + $0x244] ss:$8 sps:$4 sm:$0xff]   ;;  %v1745_v20 = vld [vmem:[#allocation5 + $0x254] ss:$8 sps:$4 sm:$0xff]  }
  0x63   :  { %1019 = vmatpush1.bf16.msra.mxu0 %v1693_v16  ;;  %973 = vmatprep.subr.bf16.mxu1 %v1795_v53  ;;  %v1827_v16 = vld [vmem:[#allocation5 + $0x80] ss:$8 sps:$4 sm:$0xff]   ;;  %v1833_v21 = vld [vmem:[#allocation5 + $0x90] ss:$8 sps:$4 sm:$0xff]   ;;  %v1748_v24 = vld [vmem:[#allocation5 + $0x264] ss:$8 sps:$4 sm:$0xff]  }
  0x64   :  { %1020 = vmatprep.subr.bf16.mxu0 %v1694_v17  ;;  %v1831_v17 = vld [vmem:[#allocation5 + $0x94] ss:$8 sps:$4 sm:$0xff]   ;;  %v1743_v23 = vld [vmem:[#allocation5 + $0x250] ss:$8 sps:$4 sm:$0xff]   ;;  %v1754_v38 = vld [vmem:[#allocation5 + $0x284] ss:$8 sps:$4 sm:$0xff]  }
  0x65   :  { %v1843_v26 = vld [vmem:[#allocation5 + $0xb4] ss:$8 sps:$4 sm:$0xff]   ;;  %v1752_v44 = vld [vmem:[#allocation5 + $0x280] ss:$8 sps:$4 sm:$0xff]   ;;  %v1857_v48 = vld [vmem:[#allocation5 + $0xd0] ss:$8 sps:$4 sm:$0xff]  }
  0x66   :  { %974 = vmatpush1.bf16.msra.mxu1 %v1797_v55  ;;  %v1751_v28 = vld [vmem:[#allocation5 + $0x274] ss:$8 sps:$4 sm:$0xff]   ;;  %v1861_v49 = vld [vmem:[#allocation5 + $0xe4] ss:$8 sps:$4 sm:$0xff]  }
  0x67   :  { %1021 = vmatpush1.bf16.msra.mxu0 %v1696_v19  ;;  %975 = vmatprep.subr.bf16.mxu1 %v1801_v56  ;;  %v1740_v19 = vld [vmem:[#allocation5 + $0x240] ss:$8 sps:$4 sm:$0xff]   ;;  %v1879_v37 = vld [vmem:[#allocation2 + $0x2c] ss:$16 sps:$4 sm:$0xff]   ;;  %v1869_v56 = vld [vmem:[#allocation5 + $0xf0] ss:$8 sps:$4 sm:$0xff]  }
  0x68   :  { %1022 = vmatprep.subr.bf16.mxu0 %v1697_v22  ;;  %v1837_v22 = vld [vmem:[#allocation5 + $0xa4] ss:$8 sps:$4 sm:$0xff]   ;;  %v1855_v42 = vld [vmem:[#allocation5 + $0xd4] ss:$8 sps:$4 sm:$0xff]   ;;  %v2143_v43 = vrot.slane %v1879_v37, %v2129_v18  ;;  %v1840_v37 = vld [vmem:[#allocation5 + $0x390] ss:$8 sps:$4 sm:$0xff]  }
  0x69   :  { %v1757_v46 = vld [vmem:[#allocation5 + $0x294] ss:$8 sps:$4 sm:$0xff]   ;;  %v1880_v58 = vld [vmem:[#allocation7 + $0x40] sm:$0xff]  }
  0x6a   :  { %976 = vmatpush1.bf16.msra.mxu1 %v1803_v61  ;;  %v1867_v53 = vld [vmem:[#allocation5 + $0xf4] ss:$8 sps:$4 sm:$0xff]   ;;  %v1766_v60 = vld [vmem:[#allocation5 + $0x2c4] ss:$8 sps:$4 sm:$0xff]  }
  0x6b   :  { %1023 = vmatpush1.bf16.msra.mxu0 %v1699_v25  ;;  %977 = vmatprep.subr.bf16.mxu1 %v1807_v62  ;;  %v1839_v25 = vld [vmem:[#allocation5 + $0xa0] ss:$8 sps:$4 sm:$0xff]   ;;  %v1763_v55 = vld [vmem:[#allocation5 + $0x2b4] ss:$8 sps:$4 sm:$0xff]  }
  0x6c   :  { %1024 = vmatprep.subr.bf16.mxu0 %v1700_v27  ;;  %v1746_v27 = vld [vmem:[#allocation5 + $0x260] ss:$8 sps:$4 sm:$0xff]  }
  0x6d   :  { %v1881_v61 = vld [vmem:[#allocation7] sm:$0xff]  }
  0x6e   :  { %978 = vmatpush1.bf16.msra.mxu1 %v1809_v3  ;;  %v1884_v3 = vld [vmem:[#allocation7 + $0x50] sm:$0xff]  }
  0x6f   :  { %1025 = vmatpush1.bf16.msra.mxu0 %v1702_v29  ;;  %979 = vmatprep.subr.bf16.mxu1 %v1813_v4  ;;  %v1845_v29 = vld [vmem:[#allocation5 + $0xb0] ss:$8 sps:$4 sm:$0xff]  }
  0x70   :  { %1026 = vmatprep.subr.bf16.mxu0 %v1703_v30  ;;  %v1873_v30 = vld [vmem:[#allocation2] ss:$16 sps:$4 sm:$0xff]  }
  0x71   :  { %v1767_v4 = vld [vmem:[#allocation5 + $0x2d0] ss:$8 sps:$4 sm:$0xff]  }
  0x72   :  { %980 = vmatpush1.bf16.msra.mxu1 %v1815_v7  ;;  %v1886_v7 = vld [vmem:[#allocation7 + $0x58] sm:$0xff]  }
  0x73   :  { %1027 = vmatpush1.bf16.msra.mxu0 %v1705_v31  ;;  %981 = vmatprep.subr.bf16.mxu1 %v1819_v8  ;;  %v1874_v31 = vld [vmem:[#allocation2 + $0x20] ss:$16 sps:$4 sm:$0xff]  }
  0x74   :  { %1028 = vmatprep.subr.bf16.mxu0 %v1706_v32  ;;  %v1749_v32 = vld [vmem:[#allocation5 + $0x270] ss:$8 sps:$4 sm:$0xff]   ;;  %v1770_v8 = vld [vmem:[#allocation5 + $0x2e0] ss:$8 sps:$4 sm:$0xff]  }
  0x76   :  { %982 = vmatpush1.bf16.msra.mxu1 %v1821_v11  ;;  %v1888_v11 = vld [vmem:[#allocation7 + $0x60] sm:$0xff]  }
  0x77   :  { %1029 = vmatpush1.bf16.msra.mxu0 %v1708_v33  ;;  %983 = vmatprep.subr.bf16.mxu1 %v1825_v12  ;;  %v1849_v33 = vld [vmem:[#allocation5 + $0xc4] ss:$8 sps:$4 sm:$0xff]   ;;  %v1776_v12 = vld [vmem:[#allocation5 + $0x2f0] ss:$8 sps:$4 sm:$0xff]  }
  0x78   :  { %1030 = vmatprep.subr.bf16.mxu0 %v1709_v34  ;;  %v109_v34 = vrot.slane %v1873_v30, %v2129_v18  ;;  %v1824_v30 = vld [vmem:[#allocation5 + $0x364] ss:$8 sps:$4 sm:$0xff]  }
  0x7a   :  { %984 = vmatpush1.bf16.msra.mxu1 %v1827_v16  ;;  %v1889_v16 = vld [vmem:[#allocation7 + $0x20] sm:$0xff]  }
  0x7b   :  { %1031 = vmatpush1.bf16.msra.mxu0 %v1711_v35  ;;  %985 = vmatprep.subr.bf16.mxu1 %v1831_v17  ;;  %v123_v35 = vrot.slane %v1874_v31, %v2129_v18  ;;  %v183_v17 = vpack.c.bf16 %v2135_v51, %v2135_v51  ;;  %v1812_v51 = vld [vmem:[#allocation5 + $0x344] ss:$8 sps:$4 sm:$0xff]   ;;  %v1822_v31 = vld [vmem:[#allocation5 + $0x360] ss:$8 sps:$4 sm:$0xff]  }
  0x7c   :  { %1032 = vmatprep.subr.bf16.mxu0 %v1712_v36  ;;  %v1878_v36 = vld [vmem:[#allocation2 + $0xc] ss:$16 sps:$4 sm:$0xff]  }
  0x7d   :  { %v2140_v41 = vrot.slane %v1878_v36, %v2129_v18  ;;  %v1863_v18 = vld [vmem:[#allocation5 + $0xe0] ss:$8 sps:$4 sm:$0xff]   ;;  %v1842_v36 = vld [vmem:[#allocation5 + $0x394] ss:$8 sps:$4 sm:$0xff]  }
  0x7e   :  { %986 = vmatpush1.bf16.msra.mxu1 %v1833_v21  ;;  %v1794_v21 = vld [vmem:[#allocation5 + $0x314] ss:$8 sps:$4 sm:$0xff]  }
  0x7f   :  { %1033 = vmatpush1.bf16.msra.mxu0 %v1714_v39  ;;  %987 = vmatprep.subr.bf16.mxu1 %v1837_v22  ;;  %v1851_v39 = vld [vmem:[#allocation5 + $0xc0] ss:$8 sps:$4 sm:$0xff]   ;;  %v2147_v47 = vcombine.low %v2140_v41, %v2143_v43  ;;  %v1792_v22 = vld [vmem:[#allocation5 + $0x310] ss:$8 sps:$4 sm:$0xff]  }
  0x80   :  { %1034 = vmatprep.subr.bf16.mxu0 %v1715_v40  ;;  %v132_v40 = vcombine.high %v109_v34, %v123_v35 }
  0x82   :  { %988 = vmatpush1.bf16.msra.mxu1 %v1839_v25  ;;  %v1806_v25 = vld [vmem:[#allocation5 + $0x334] ss:$8 sps:$4 sm:$0xff]  }
  0x83   :  { %1035 = vmatpush1.bf16.msra.mxu0 %v1717_v45  ;;  %989 = vmatprep.subr.bf16.mxu1 %v1843_v26  ;;  %v180_v45 = vpack.c.bf16 %v132_v40, %v132_v40  ;;  %v1804_v26 = vld [vmem:[#allocation5 + $0x330] ss:$8 sps:$4 sm:$0xff]   ;;  %v1854_v40 = vld [vmem:[#allocation5 + $0x3b4] ss:$8 sps:$4 sm:$0xff]  }
  0x84   :  { %1036 = vmatprep.subr.bf16.mxu0 %v1718_v50  ;;  %v1755_v50 = vld [vmem:[#allocation5 + $0x290] ss:$8 sps:$4 sm:$0xff]  }
  0x85   :  { %999 = vmatprep.mubr.bf16.mxu1 %v180_v45  ;;  %v1864_v45 = vld [vmem:[#allocation5 + $0x3d0] ss:$8 sps:$4 sm:$0xff]  }
  0x86   :  { %990 = vmatpush1.bf16.msra.mxu1 %v1845_v29  ;;  %v1816_v29 = vld [vmem:[#allocation5 + $0x350] ss:$8 sps:$4 sm:$0xff]  }
  0x87   :  { %1037 = vmatpush1.bf16.msra.mxu0 %v1720_v52  ;;  %991 = vmatprep.subr.bf16.mxu1 %v1849_v33  ;;  %v1760_v52 = vld [vmem:[#allocation5 + $0x2a4] ss:$8 sps:$4 sm:$0xff]   ;;  %v1828_v33 = vld [vmem:[#allocation5 + $0x370] ss:$8 sps:$4 sm:$0xff]  }
  0x88   :  { %1038 = vmatprep.subr.bf16.mxu0 %v1721_v54  ;;  %v1758_v54 = vld [vmem:[#allocation5 + $0x2a0] ss:$8 sps:$4 sm:$0xff]  }
  0x8a   :  { %992 = vmatpush1.bf16.msra.mxu1 %v1851_v39  ;;  %v1846_v39 = vld [vmem:[#allocation5 + $0x3a0] ss:$8 sps:$4 sm:$0xff]  }
  0x8b   :  { %1039 = vmatpush1.bf16.msra.mxu0 %v1723_v57  ;;  %993 = vmatprep.subr.bf16.mxu1 %v1855_v42  ;;  %v131_v57 = vcombine.low %v109_v34, %v123_v35  ;;  %v1836_v34 = vld [vmem:[#allocation5 + $0x384] ss:$8 sps:$4 sm:$0xff]   ;;  %v1834_v35 = vld [vmem:[#allocation5 + $0x380] ss:$8 sps:$4 sm:$0xff]  }
  0x8c   :  { %1049 = vmatprep.subr.bf16.mxu0 %v1730_v59  ;;  %v1761_v59 = vld [vmem:[#allocation5 + $0x2b0] ss:$8 sps:$4 sm:$0xff]   ;;  %v1860_v42 = vld [vmem:[#allocation5 + $0x3c4] ss:$8 sps:$4 sm:$0xff]  }
  0x8d   :  { %v179_v62 = vpack.c.bf16 %v131_v57, %v131_v57  ;;  %v1895_v57 = vld [vmem:[#allocation7 + $0x38] sm:$0xff]  }
  0x8e   :  { %1041 = vmatmul.mubr.bf16.vlgmr.msra.gmra.mrb[0].mxu0 %v181_v63  ;;  %994 = vmatpush1.bf16.msra.mxu1 %v1857_v48  ;;  %v1882_v63 = vld [vmem:[#allocation7 + $0x48] sm:$0xff]  }
  0x8f   :  { %1050 = vmatpush1.bf16.msra.mxu0 %v1728_v0  ;;  %1081 = vmatprep.mubr.bf16.mxu0 %v184_v2  ;;  %v1764_v0 = vld [vmem:[#allocation5 + $0x2c0] ss:$8 sps:$4 sm:$0xff]  }
  0x90   :  { %1051 = vmatprep.subr.bf16.mxu0 %v1733_v1  ;;  %995 = vmatprep.subr.bf16.mxu1 %v1861_v49  ;;  %v1769_v1 = vld [vmem:[#allocation5 + $0x2d4] ss:$8 sps:$4 sm:$0xff]   ;;  %v1883_v2 = vld [vmem:[#allocation7 + $0x8] sm:$0xff]  }
  0x91   :  { %v1870_v48 = vld [vmem:[#allocation5 + $0x3e0] ss:$8 sps:$4 sm:$0xff]   ;;  %v1877_v49 = vld [vmem:[#allocation5 + $0x3f4] ss:$8 sps:$4 sm:$0xff]  }
  0x92   :  { %996 = vmatpush1.bf16.msra.mxu1 %v1863_v18  ;;  %v1890_v18 = vld [vmem:[#allocation7 + $0x68] sm:$0xff]  }
  0x93   :  { %1052 = vmatpush1.bf16.msra.mxu0 %v1731_v5  ;;  %997 = vmatprep.subr.bf16.mxu1 %v1867_v53  ;;  %v1772_v5 = vld [vmem:[#allocation5 + $0x2e4] ss:$8 sps:$4 sm:$0xff]  }
  0x94   :  { %1053 = vmatprep.subr.bf16.mxu0 %v1736_v6  ;;  %v1885_v6 = vld [vmem:[#allocation7 + $0x10] sm:$0xff]   ;;  %v1891_v53 = vld [vmem:[#allocation7 + $0x28] sm:$0xff]  }
  0x96   :  { %998 = vmatpush1.bf16.msra.mxu1 %v1869_v56  ;;  %v1894_v56 = vld [vmem:[#allocation7 + $0x78] sm:$0xff]  }
  0x97   :  { %1054 = vmatpush1.bf16.msra.mxu0 %v1734_v9  ;;  %1597 = vmatprep.subr.bf16.mxu1 %v1880_v58  ;;  %v1778_v9 = vld [vmem:[#allocation5 + $0x2f4] ss:$8 sps:$4 sm:$0xff]   ;;  %v2033_v58 = vmov 0.0  }
  0x98   :  { %1055 = vmatprep.subr.bf16.mxu0 %v1739_v10  ;;  %v1887_v10 = vld [vmem:[#allocation7 + $0x18] sm:$0xff]  }
  0x99   :  { %1000 = vmatmul.mubr.bf16.vlgmr.msra.gmra.mrb[0].mxu1 %v179_v62  ;;  %v319_v62 = vsub.s32 0, %v2126_v15 }
  0x9a   :  { %1598 = vmatpush3.bf16.msra.mxu1 %v1881_v61 }
  0x9b   :  { %1056 = vmatpush1.bf16.msra.mxu0 %v1737_v13  ;;  %1599 = vmatprep.subr.bf16.mxu1 %v1882_v63  ;;  %v170_v13 = vcombine.high %v2140_v41, %v2143_v43  ;;  %v1852_v41 = vld [vmem:[#allocation5 + $0x3b0] ss:$8 sps:$4 sm:$0xff]   ;;  %v1858_v43 = vld [vmem:[#allocation5 + $0x3c0] ss:$8 sps:$4 sm:$0xff]  }
  0x9c   :  { %1057 = vmatprep.subr.bf16.mxu0 %v1742_v14  ;;  %v1788_v14 = vld [vmem:[#allocation5 + $0x304] ss:$8 sps:$4 sm:$0xff]   ;;  %v315_v63 = vld [vmem:[%s2180_s2] sm:$0x3] }
  0x9e   :  { %1600 = vmatpush3.bf16.msra.mxu1 %v1883_v2 }
  0x9f   :  { %1058 = vmatpush1.bf16.msra.mxu0 %v1740_v19  ;;  %1601 = vmatprep.subr.bf16.mxu1 %v1884_v3  ;;  %v1786_v19 = vld [vmem:[#allocation5 + $0x300] ss:$8 sps:$4 sm:$0xff]  }
  0xa0   :  { %1059 = vmatprep.subr.bf16.mxu0 %v1745_v20  ;;  %v186_v20 = vpack.c.bf16 %v170_v13, %v170_v13 }
  0xa2   :  { %1602 = vmatpush3.bf16.msra.mxu1 %v1885_v6 }
  0xa3   :  { %1060 = vmatpush1.bf16.msra.mxu0 %v1743_v23  ;;  %1603 = vmatprep.subr.bf16.mxu1 %v1886_v7  ;;  %v1800_v23 = vld [vmem:[#allocation5 + $0x324] ss:$8 sps:$4 sm:$0xff]  }
  0xa4   :  { %1061 = vmatprep.subr.bf16.mxu0 %v1748_v24  ;;  %v1798_v24 = vld [vmem:[#allocation5 + $0x320] ss:$8 sps:$4 sm:$0xff]  }
  0xa6   :  { %1604 = vmatpush3.bf16.msra.mxu1 %v1887_v10 }
  0xa7   :  { %1062 = vmatpush1.bf16.msra.mxu0 %v1746_v27  ;;  %1605 = vmatprep.subr.bf16.mxu1 %v1888_v11  ;;  %v1810_v27 = vld [vmem:[#allocation5 + $0x340] ss:$8 sps:$4 sm:$0xff]  }
  0xa8   :  { %1063 = vmatprep.subr.bf16.mxu0 %v1751_v28  ;;  %v1818_v28 = vld [vmem:[#allocation5 + $0x354] ss:$8 sps:$4 sm:$0xff]  }
  0xaa   :  { %1606 = vmatpush3.bf16.msra.mxu1 %v1889_v16 }
  0xab   :  { %1064 = vmatpush1.bf16.msra.mxu0 %v1749_v32  ;;  %v1830_v32 = vld [vmem:[#allocation5 + $0x374] ss:$8 sps:$4 sm:$0xff]   ;;  %1607 = vmatprep.subr.bf16.mxu1 %v1890_v18 }
  0xac   :  { %1065 = vmatprep.subr.bf16.mxu0 %v1754_v38  ;;  %v1848_v38 = vld [vmem:[#allocation5 + $0x3a4] ss:$8 sps:$4 sm:$0xff]  }
  0xae   :  { %1608 = vmatpush3.bf16.msra.mxu1 %v1891_v53 }
  0xaf   :  { %1066 = vmatpush1.bf16.msra.mxu0 %v1752_v44  ;;  %v1866_v44 = vld [vmem:[#allocation5 + $0x3d4] ss:$8 sps:$4 sm:$0xff]  }
  0xb0   :  { %1067 = vmatprep.subr.bf16.mxu0 %v1757_v46  ;;  %v1872_v46 = vld [vmem:[#allocation5 + $0x3e4] ss:$8 sps:$4 sm:$0xff]  }
  0xb3   :  { %1068 = vmatpush1.bf16.msra.mxu0 %v1755_v50  ;;  %v1875_v50 = vld [vmem:[#allocation5 + $0x3f0] ss:$8 sps:$4 sm:$0xff]  }
  0xb4   :  { %1069 = vmatprep.subr.bf16.mxu0 %v1760_v52  ;;  %v185_v52 = vpack.c.bf16 %v2147_v47, %v2147_v47 }
  0xb7   :  { %1070 = vmatpush1.bf16.msra.mxu0 %v1758_v54  ;;  %v1892_v54 = vld [vmem:[#allocation7 + $0x70] sm:$0xff]  }
  0xb8   :  { %1071 = vmatprep.subr.bf16.mxu0 %v1763_v55  ;;  %v1893_v55 = vld [vmem:[#allocation7 + $0x30] sm:$0xff]   ;;  %1609 = vmatprep.subr.bf16.mxu1 %v1892_v54 }
  0xb9   :  { %1610 = vmatpush3.bf16.msra.mxu1 %v1893_v55 }
  0xba   :  { %1611 = vmatprep.subr.bf16.mxu1 %v1894_v56 }
  0xbb   :  { %1072 = vmatpush1.bf16.msra.mxu0 %v1761_v59 }
  0xbc   :  { %1073 = vmatprep.subr.bf16.mxu0 %v1766_v60 }
  0xbd   :  { %1612 = vmatpush3.bf16.msra.mxu1 %v1895_v57 }
  0xbe   :  { %1628 = vmatprep.subr.bf16.mxu1 %v2033_v58 }
  0xbf   :  { %1074 = vmatpush1.bf16.msra.mxu0 %v1764_v0  ;;  %v323_v0 = vsub.s32 1, %v2126_v15  ;;  %v1898_v15 = vld [vmem:[#allocation8 + $0x10] sm:$0xff]  }
  0xc0   :  { %1075 = vmatprep.subr.bf16.mxu0 %v1769_v1  ;;  %v320_v1 = vrot.slane %v315_v63, %v319_v62 }
  0xc1   :  { %v324_v2 = vrot.slane %v315_v63, %v323_v0 }
  0xc3   :  { %1076 = vmatpush1.bf16.msra.mxu0 %v1767_v4 }
  0xc4   :  { %1077 = vmatprep.subr.bf16.mxu0 %v1772_v5 }
  0xc7   :  { %1078 = vmatpush1.bf16.msra.mxu0 %v1770_v8 }
  0xc8   :  { %1079 = vmatprep.subr.bf16.mxu0 %v1778_v9 }
  0xcb   :  { %1080 = vmatpush1.bf16.msra.mxu0 %v1776_v12 }
  0xcc   :  { %1090 = vmatprep.subr.bf16.mxu0 %v1788_v14  ;;  %v1896_v14 = vld [vmem:[#allocation8] sm:$0xff]  }
  0xce   :  { %1082 = vmatmul.mubr.bf16.vlgmr.msra.gmra.mrb[0].mxu0 %v183_v17  ;;  %v1897_v17 = vld [vmem:[#allocation8 + $0x8] sm:$0xff]  }
  0xcf   :  { %1091 = vmatpush1.bf16.msra.mxu0 %v1786_v19  ;;  %1122 = vmatprep.mubr.bf16.mxu0 %v186_v20  ;;  %v1899_v19 = vld [vmem:[#allocation8 + $0x18] sm:$0xff]   ;;  %v1900_v20 = vld [vmem:[#allocation8 + $0x20] sm:$0xff]  }
  0xd0   :  { %1092 = vmatprep.subr.bf16.mxu0 %v1794_v21  ;;  %v1901_v21 = vld [vmem:[#allocation8 + $0x28] sm:$0xff]  }
  0xd3   :  { %1093 = vmatpush1.bf16.msra.mxu0 %v1792_v22  ;;  %v1902_v22 = vld [vmem:[#allocation8 + $0x30] sm:$0xff]  }
  0xd4   :  { %1094 = vmatprep.subr.bf16.mxu0 %v1800_v23  ;;  %v1903_v23 = vld [vmem:[#allocation8 + $0x38] sm:$0xff]  }
  0xd7   :  { %1095 = vmatpush1.bf16.msra.mxu0 %v1798_v24 }
  0xd8   :  { %1096 = vmatprep.subr.bf16.mxu0 %v1806_v25  ;;  %v1571_v25 = vld [vmem:[%s2182_s4] ss:$0 sm:$0xff] }
  0xdb   :  { %1097 = vmatpush1.bf16.msra.mxu0 %v1804_v26 }
  0xdc   :  { %1098 = vmatprep.subr.bf16.mxu0 %v1812_v51 }
  0xdf   :  { %1099 = vmatpush1.bf16.msra.mxu0 %v1810_v27 }
  0xe0   :  { %1100 = vmatprep.subr.bf16.mxu0 %v1818_v28 }
  0xe3   :  { %1101 = vmatpush1.bf16.msra.mxu0 %v1816_v29 }
  0xe4   :  { %1102 = vmatprep.subr.bf16.mxu0 %v1824_v30 }
  0xe7   :  { %1103 = vmatpush1.bf16.msra.mxu0 %v1822_v31 }
  0xe8   :  { %1104 = vmatprep.subr.bf16.mxu0 %v1830_v32  ;;  %v1588_v32 = vld [vmem:[%s2184_s6] ss:$0 sm:$0xff] }
  0xeb   :  { %1105 = vmatpush1.bf16.msra.mxu0 %v1828_v33 }
  0xec   :  { %1106 = vmatprep.subr.bf16.mxu0 %v1836_v34 }
  0xef   :  { %1107 = vmatpush1.bf16.msra.mxu0 %v1834_v35 }
  0xf0   :  { %1108 = vmatprep.subr.bf16.mxu0 %v1842_v36 }
  0xf3   :  { %1109 = vmatpush1.bf16.msra.mxu0 %v1840_v37 }
  0xf4   :  { %1110 = vmatprep.subr.bf16.mxu0 %v1848_v38 }
  0xf7   :  { %1111 = vmatpush1.bf16.msra.mxu0 %v1846_v39 }
  0xf8   :  { %1112 = vmatprep.subr.bf16.mxu0 %v1854_v40 }
  0xfb   :  { %1113 = vmatpush1.bf16.msra.mxu0 %v1852_v41 }
  0xfc   :  { %1114 = vmatprep.subr.bf16.mxu0 %v1860_v42 }
  0xff   :  { %1115 = vmatpush1.bf16.msra.mxu0 %v1858_v43 }
 0x100   :  { %1116 = vmatprep.subr.bf16.mxu0 %v1866_v44 }
 0x103   :  { %1117 = vmatpush1.bf16.msra.mxu0 %v1864_v45 }
 0x104   :  { %1118 = vmatprep.subr.bf16.mxu0 %v1872_v46 }
 0x107   :  { %1119 = vmatpush1.bf16.msra.mxu0 %v1870_v48 }
 0x108   :  { %1120 = vmatprep.subr.bf16.mxu0 %v1877_v49 }
 0x10b   :  { %1121 = vmatpush1.bf16.msra.mxu0 %v1875_v50 }
 0x10e   :  { %1123 = vmatmul.mubr.bf16.vlgmr.msra.gmra.mrb[0].mxu0 %v185_v52 }
 0x16c   :  { %v1001_v59 = vpop.f32.mrb[0].mxu1 }
 0x16d   :  { %v1003_v60 = vpop.f32.mrb[1].mxu1  ;;  %v1002_v3 = vadd.f32 %v1001_v59, %v320_v1 }
 0x16e   :  { %v1005_v61 = vpop.f32.mrb[2].mxu1  ;;  %v1004_v4 = vadd.f32 %v1003_v60, %v324_v2 }
 0x16f   :  { %v1006_v47 = vpop.f32.mrb[3].mxu1 }
 0x1e1   :  { %v1124_v5 = vpop.f32.mrb[0].mxu0 }
 0x1e2   :  { %v1649_v6 = vadd.f32 %v1124_v5, %v1002_v3  ;;  %v1126_v7 = vpop.f32.mrb[1].mxu0 }
 0x1e3   :  { %v1651_v8 = vadd.f32 %v1126_v7, %v1004_v4  ;;  %v1128_v9 = vpop.f32.mrb[2].mxu0 }
 0x1e4   :  { %v1131_v10 = vmax.f32 %v1649_v6, 0.0  ;;  %v1129_v11 = vpop.f32.mrb[3].mxu0 }
 0x1e5   :  { %v1132_v12 = vmax.f32 %v1651_v8, 0.0 }
 0x1e6   :  { %v1133_v16 = vpack.c.bf16 %v1131_v10, %v1131_v10 }
 0x1e7   :  { %v1134_v13 = vpack.c.bf16 %v1132_v12, %v1132_v12 }
 0x1e9   :  { %1302 = vmatprep.mubr.bf16.mxu1 %v1134_v13 }
 0x1ea   :  { %1303 = vmatmul.mubr.bf16.vlgmr.msra.gmra.mrb[4].mxu1 %v1133_v16 }
 0x1eb   :  { %1629 = vmatpush3.bf16.msra.mxu1 %v1896_v14  ;;  %1644 = vmatprep.mubr.msk.bf16.mxu1 %vm2034_vm0, %v2033_v58 }
 0x1ec   :  { %1630 = vmatprep.subr.bf16.mxu1 %v2033_v58 }
 0x1ef   :  { %1631 = vmatpush3.bf16.msra.mxu1 %v1897_v17 }
 0x1f0   :  { %1632 = vmatprep.subr.bf16.mxu1 %v2033_v58 }
 0x1f3   :  { %1633 = vmatpush3.bf16.msra.mxu1 %v1898_v15 }
 0x1f4   :  { %1634 = vmatprep.subr.bf16.mxu1 %v2033_v58 }
 0x1f7   :  { %1635 = vmatpush3.bf16.msra.mxu1 %v1899_v19 }
 0x1f8   :  { %1636 = vmatprep.subr.bf16.mxu1 %v2033_v58 }
 0x1fb   :  { %1637 = vmatpush3.bf16.msra.mxu1 %v1900_v20 }
 0x1fc   :  { %1638 = vmatprep.subr.bf16.mxu1 %v2033_v58 }
 0x1ff   :  { %1639 = vmatpush3.bf16.msra.mxu1 %v1901_v21 }
 0x200   :  { %1640 = vmatprep.subr.bf16.mxu1 %v2033_v58 }
 0x203   :  { %1641 = vmatpush3.bf16.msra.mxu1 %v1902_v22 }
 0x204   :  { %1642 = vmatprep.subr.bf16.mxu1 %v2033_v58 }
 0x207   :  { %1643 = vmatpush3.bf16.msra.mxu1 %v1903_v23 }
 0x2bd   :  { %v1613_v24 = vpop.f32.mrb[4].mxu1 }
 0x2be   :  { %v1614_v26 = vpop.f32.mrb[5].mxu1 }
 0x2bf   :  { %v1615_v51 = vadd.f32 %v1614_v26, %v1613_v24  ;;  %v1616_v27 = vpop.f32.mrb[6].mxu1 }
 0x2c0   :  { %v1617_v28 = vpop.f32.mrb[7].mxu1 }
 0x2c1   :  { %v1305_v29 = vadd.f32 %v1615_v51, %v1571_v25 }
 0x2c3   :  { %v1310_v30 = vmax.f32 %v1305_v29, 0.0 }
 0x2c5   :  { %v1311_v31 = vpack.c.bf16 %v1310_v30, %v1310_v30 }
 0x2c7   :  { %1645 = vmatmul.mubr.bf16.vlgmr.msra.gmra.mrb[8].mxu1 %v1311_v31 }
 0x39a   :  { %v1417_v33 = vpop.f32.mrb[8].mxu1 }
 0x39b   :  { %v1418_v34 = vadd.f32 %v1588_v32, %v1417_v33  ;;  %v1646_v35 = vpop.f32.mrb[9].mxu1 }
 0x39c   :  { %v1420_v36 = vpop.f32.mrb[10].mxu1 }
 0x39d   :  { %1423 = vst [vmem:[#allocation10] sm:$0xff] %v1418_v34  ;;  %v1647_v37 = vpop.f32.mrb[11].mxu1 }
 0x39e   :  { %1428 = vsyncadd [#allocation4], 96  ;;  %s2035_s4 = smov [#allocation10]  }
 0x39f   :  { %s1429_s10 = sshll.u32 %s2035_s4, 4  ;;  %s1430_s10 = int_to_ptr.vmem [resolvable:$true] %s1429_s10 }
 0x3a0   :  { %s1992_s11 = scalar_lea.vmem %s1430_s10, 32  ;;  %s1996_s12 = scalar_lea.vmem %s1430_s10, 128 }
 0x3a1   :  { %p1993_p4 = scmp.ne.s32.totalorder %s1430_s10, %s1992_s11  ;;  %p1997_p5 = scmp.lt.s32.totalorder %s1430_s10, %s1430_s10 }
 0x3a2   :  { %p1998_p6 = scmp.lt.s32.totalorder %s1996_s12, %s1992_s11 }
 0x3a4   :  { %p1999_p7 = por %p1998_p6, %p1997_p5 }
 0x3a6   :  { %p2000_p8 = pnand %p1999_p7, %p1993_p4 }
 0x3a8   :  { %2003 = shalt.err (!%p2000_p8)
}
 0x3a9   :  { %s2004_s14 = scalar_lea.hbm %s2185_s7, 32 }
 0x3aa   :  { %p2005_p9 = scmp.ne.s32.totalorder %s2185_s7, %s2004_s14  ;;  %p2008_p10 = scmp.lt.u32.totalorder %s2004_s14, %s2185_s7 }
 0x3ac   :  { %p2010_p11 = pnand %p2008_p10, %p2005_p9 }
 0x3ae   :  { %2013 = shalt.err (!%p2010_p11)
}
 0x3af   :  { %s2036_s18 = smov 32   ;;  %s2037_s19 = smov 2  }
 0x3b0   :  { %1435 = dma.vmem_to_hbm [thread:$0]  %s1430_s10, 32, %s2185_s7, [#allocation4], %s2036_s18, %s2036_s18, %s2037_s19  }
 0x3b1   :  { %2020 = dma.done.wait [#allocation4], 128  }
 0x3b2   :  { %2021 = vsyncadd [#allocation4], 4294967168 }
 0x3b3   :  { %1439 = vsyncpa [#allocation3], 1 }
 0x3b4   :  { %1440 = vsyncpa [#allocation6], 1 }
 0x3b5   :  { %1441 = vsyncpa [#allocation9], 1 }
 0x3b6   :  { %1442 = vsyncpa [#allocation4], 1 }

</bundles_post_ra>
